<compile_context>
chip_gen: v7x
topology: tpu7x:2x2x1
jax: 0.10.0
libtpu: 0.0.40
codegen_flags: <defaults>
</compile_context>

<pallas_src>
import functools
import math

import jax
import jax.numpy as jnp
from jax.experimental import pallas as pl
from jax.experimental.pallas import tpu as pltpu


_LANE = 128                     # minimum lane width
_SMALL_SLAB_BYTES = 1 << 20     # <= 1 MiB / operand -> single whole-slab block


# --------------------------------------------------------------------------- kernels
def _htdglif_kernel(x_ref, mem_ref, spike_ref, mem_out_ref, *, threshold, dt):
    """Fused elementwise HTDGLIF step over one VMEM tile (steady-state form)."""
    x = jnp.maximum(x_ref[...], 0.0)                      # F.relu
    m = mem_ref[...] + x * dt                             # IFNode.integral
    fired = m >= threshold
    zero = jnp.zeros_like(m)
    spike_ref[...] = jnp.where(fired, m, zero)            # spike keeps the mem value
    mem_out_ref[...] = jnp.where(fired, zero, m) * dt     # reset-to-zero, then * dt


def _htdglif_init_kernel(x_ref, spike_ref, mem_out_ref, *, threshold, dt, v_reset):
    """First-step variant: membrane state is the constant v_reset (no mem input)."""
    x = jnp.maximum(x_ref[...], 0.0)
    m = x * dt + v_reset
    fired = m >= threshold
    zero = jnp.zeros_like(m)
    spike_ref[...] = jnp.where(fired, m, zero)
    mem_out_ref[...] = jnp.where(fired, zero, m) * dt


# --------------------------------------------------------------------------- helpers
def _jnp_step(x, mem, threshold, dt):
    """Pure-JAX reference / fallback for one HTDGLIFNode forward step."""
    x = jnp.maximum(x, 0.0)
    m = mem + x * dt
    fired = m >= threshold
    zero = jnp.zeros_like(m)
    spike = jnp.where(fired, m, zero)
    new_mem = jnp.where(fired, zero, m) * dt
    return spike, new_mem


def _round_up(v, m):
    return (v + m - 1) // m * m


def _sublane_multiple(dtype):
    # f32 -> 8, bf16/f16 -> 16, int8/fp8 -> 32 (min tile sublane counts).
    return max(8, 32 // jnp.dtype(dtype).itemsize)


def _pick_lane(total):
    for cand in (512, 256, _LANE):
        if total % cand == 0:
            return cand
    return None


@functools.lru_cache(maxsize=None)
def _chip_profile():
    """(num_tensorcores, per-operand block byte cap, vmem limit bytes)."""
    kind = ""
    try:
        kind = jax.devices()[0].device_kind.lower()
    except Exception:
        pass
    if "v7" in kind:
        # v7x: 2 TensorCores, ~3.2 TB/s HBM, 64 MiB VMEM -> bigger blocks, keep
        # >=2 grid steps per core. 4 operands x 2 buffers x 4 MiB = 32 MiB.
        return 2, 4 << 20, 48 << 20
    # v5e / v6e: single TensorCore -> never split just to raise the step count.
    return 1, 2 << 20, 32 << 20


def _slab_forward(x2, m2, *, threshold, dt, v_reset):
    """Run the fused step over a lane-dense (rows, lane) slab.  m2 may be None."""
    rows, lane = x2.shape
    dtype = x2.dtype
    itemsize = jnp.dtype(dtype).itemsize
    sub = _sublane_multiple(dtype)

    out_shape = (jax.ShapeDtypeStruct((rows, lane), dtype),
                 jax.ShapeDtypeStruct((rows, lane), dtype))

    if m2 is None:
        kernel = functools.partial(_htdglif_init_kernel, threshold=float(threshold),
                                   dt=float(dt), v_reset=float(v_reset))
        operands = (x2,)
        aliases = {}
    else:
        kernel = functools.partial(_htdglif_kernel, threshold=float(threshold),
                                   dt=float(dt))
        operands = (x2, m2)
        aliases = {1: 1}   # donate the old membrane state into the new-mem output

    slab_bytes = rows * lane * itemsize
    if slab_bytes <= _SMALL_SLAB_BYTES:
        # Small-tensor fast path: one whole-array block, no grid / pipelining.
        return pl.pallas_call(
            kernel, out_shape=out_shape, input_output_aliases=aliases,
        )(*operands)

    n_tc, block_cap, vmem_limit = _chip_profile()
    tb = max(sub, block_cap // (lane * itemsize) // sub * sub)
    tb = min(tb, _round_up(rows, sub))
    if n_tc > 1:
        # Multi-TC chip: make sure each core gets >=2 steps so prefetch/writeback
        # overlap is preserved, but keep blocks >= 256 KiB per operand.
        floor = max(sub, (256 << 10) // (lane * itemsize) // sub * sub)
        while pl.cdiv(rows, tb) < 2 * n_tc and tb > floor:
            new_tb = max(floor, _round_up(tb // 2, sub))
            if new_tb == tb:
                break
            tb = new_tb

    spec = pl.BlockSpec((tb, lane), lambda i: (i, 0))
    return pl.pallas_call(
        kernel,
        out_shape=out_shape,
        grid_spec=pltpu.PrefetchScalarGridSpec(
            num_scalar_prefetch=0,
            grid=(pl.cdiv(rows, tb),),          # ragged final block masked by Pallas
            in_specs=[spec] * len(operands),
            out_specs=[spec, spec]),
        input_output_aliases=aliases,
        compiler_params=pltpu.CompilerParams(
            dimension_semantics=("parallel",),
            vmem_limit_bytes=vmem_limit),
    )(*operands)


# --------------------------------------------------------------------------- jitted steps
@functools.partial(jax.jit, static_argnames=("threshold", "dt"), donate_argnums=(1,))
def _step(x, mem, *, threshold, dt):
    shape = x.shape
    total = math.prod(shape)
    if total == 0 or total % _LANE != 0:
        # Ragged flat size: a single fused XLA elementwise pass is already at the HBM
        # roofline; any pad/slice/concat around a Pallas call adds a full extra pass.
        return _jnp_step(x, mem, threshold, dt)
    lane = _pick_lane(total)
    rows = total // lane
    spike2, mem2 = _slab_forward(x.reshape(rows, lane), mem.reshape(rows, lane),
                                 threshold=threshold, dt=dt, v_reset=0.0)
    return spike2.reshape(shape), mem2.reshape(shape)


@functools.partial(jax.jit, static_argnames=("threshold", "dt", "v_reset"))
def _first_step(x, *, threshold, dt, v_reset):
    shape = x.shape
    total = math.prod(shape)
    if total == 0 or total % _LANE != 0:
        mem0 = jnp.full(shape, v_reset, x.dtype)
        return _jnp_step(x, mem0, threshold, dt)
    lane = _pick_lane(total)
    rows = total // lane
    spike2, mem2 = _slab_forward(x.reshape(rows, lane), None,
                                 threshold=threshold, dt=dt, v_reset=v_reset)
    return spike2.reshape(shape), mem2.reshape(shape)


def htdglif_step(inputs, mem=None, *, threshold=0.5, dt=1.0, v_reset=0.0):
    """One HTDGLIFNode forward step.  Returns (spike, new_mem), shaped like inputs.

    NOTE: when `mem` is a jax.Array of matching shape/dtype it is donated (its buffer
    is reused for the new membrane state); do not read it after this call.
    """
    if mem is None:
        return _first_step(inputs, threshold=float(threshold), dt=float(dt),
                           v_reset=float(v_reset))
    if not (isinstance(mem, jax.Array)
            and mem.shape == inputs.shape and mem.dtype == inputs.dtype):
        mem = jnp.broadcast_to(jnp.asarray(mem, dtype=inputs.dtype), inputs.shape)
    return _step(inputs, mem, threshold=float(threshold), dt=float(dt))


# --------------------------------------------------------------------------- module wrapper
class HTDGLIFNode:
    """Thin stateful wrapper mirroring the PyTorch module's forward pass
    (default single-step path: layer_by_layer=False, n_groups=1)."""

    def __init__(self, threshold=0.5, tau=2.0, v_reset=0.0, dt=1.0, step=8):
        # `tau` is accepted for signature parity; HTDGLIFNode's forward never uses it.
        self.threshold = float(threshold)
        self.v_reset = float(v_reset)
        self.dt = float(dt)
        self.step = step
        self.warm_up = False
        self.mem = None
        self.spike = None

    def n_reset(self):
        self.mem = None
        self.spike = None

    def set_n_warm_up(self, flag):
        self.warm_up = flag

    def __call__(self, inputs):
        if self.warm_up:
            # warm-up path: plain ReLU, membrane state untouched (matches PyTorch).
            return jnp.maximum(inputs, 0.0)
        spike, new_mem = htdglif_step(inputs, self.mem, threshold=self.threshold,
                                      dt=self.dt, v_reset=self.v_reset)
        self.mem = new_mem
        self.spike = spike
        return spike


# --------------------------------------------------------------------------- demo / check
if __name__ == "__main__":
    key = jax.random.PRNGKey(0)
    B, C, H, W = 2, 4, 16, 16
    steps = 8  # simulation steps, as in the module default

    node = HTDGLIFNode(threshold=0.5, tau=2.0, dt=1.0, step=steps)

    keys = jax.random.split(key, steps)
    mem_ref = jnp.zeros((B, C, H, W), jnp.float32)
    for t in range(steps):
        x = jax.random.normal(keys[t], (B, C, H, W), dtype=jnp.float32)
        spike = node(x)
        jax.block_until_ready(spike)

        spike_ref, mem_ref = _jnp_step(x, mem_ref, 0.5, 1.0)
        assert jnp.allclose(spike, spike_ref, rtol=1e-6, atol=1e-6)
        assert jnp.allclose(node.mem, mem_ref, rtol=1e-6, atol=1e-6)

    # Exercise the tiled (gridded) path once on a larger tensor.
    xb = jax.random.normal(jax.random.PRNGKey(1), (16, 64, 32, 32), jnp.float32)
    mem_for_ref = jnp.full(xb.shape, 0.25, jnp.float32)     # kept for the reference
    mem_for_kernel = jnp.full(xb.shape, 0.25, jnp.float32)  # donated into the kernel
    sp_ref, nm_ref = _jnp_step(xb, mem_for_ref, 0.5, 1.0)
    sp, nm = htdglif_step(xb, mem_for_kernel, threshold=0.5, dt=1.0)
    jax.block_until_ready((sp, nm))
    assert jnp.allclose(sp, sp_ref, rtol=1e-6, atol=1e-6)
    assert jnp.allclose(nm, nm_ref, rtol=1e-6, atol=1e-6)

    print("KERNEL_OK")
</pallas_src>

<mosaic_0001>
module attributes {stable_mosaic.version = 11 : i64} {
  func.func @_htdglif_init_kernel(%arg0: memref<4x512xf32, #tpu.memory_space<vmem>>, %arg1: memref<4x512xf32, #tpu.memory_space<vmem>>, %arg2: memref<4x512xf32, #tpu.memory_space<vmem>>) attributes {dimension_semantics = [], scalar_prefetch = 0 : i64, scratch_operands = 0 : i64, tpu.core_type = #tpu.core_type<tc>} {
    %c0 = arith.constant 0 : index
    %c0_0 = arith.constant 0 : index
    %0 = vector.load %arg0[%c0, %c0_0] : memref<4x512xf32, #tpu.memory_space<vmem>>, vector<4x512xf32>
    %cst = arith.constant 0.000000e+00 : f32
    %1 = vector.broadcast %cst : f32 to vector<4x512xf32>
    %2 = arith.maximumf %0, %1 : vector<4x512xf32>
    %cst_1 = arith.constant 1.000000e+00 : f32
    %3 = vector.broadcast %cst_1 : f32 to vector<4x512xf32>
    %4 = arith.mulf %2, %3 : vector<4x512xf32>
    %cst_2 = arith.constant 0.000000e+00 : f32
    %5 = vector.broadcast %cst_2 : f32 to vector<4x512xf32>
    %6 = arith.addf %4, %5 : vector<4x512xf32>
    %cst_3 = arith.constant 5.000000e-01 : f32
    %7 = vector.broadcast %cst_3 : f32 to vector<4x512xf32>
    %8 = arith.cmpf oge, %6, %7 : vector<4x512xf32>
    %cst_4 = arith.constant 0.000000e+00 : f32
    %9 = vector.broadcast %cst_4 : f32 to vector<4x512xf32>
    %10 = arith.select %8, %6, %9 : vector<4x512xi1>, vector<4x512xf32>
    %c0_5 = arith.constant 0 : index
    %c0_6 = arith.constant 0 : index
    %11 = vector.load %arg1[%c0_5, %c0_6] : memref<4x512xf32, #tpu.memory_space<vmem>>, vector<4x512xf32>
    tpu.vector_store %arg1[%c0_5, %c0_6], %10 {strides = array<i32>} : memref<4x512xf32, #tpu.memory_space<vmem>>, vector<4x512xf32>,
    %12 = arith.select %8, %9, %6 : vector<4x512xi1>, vector<4x512xf32>
    %cst_7 = arith.constant 1.000000e+00 : f32
    %13 = vector.broadcast %cst_7 : f32 to vector<4x512xf32>
    %14 = arith.mulf %12, %13 : vector<4x512xf32>
    %c0_8 = arith.constant 0 : index
    %c0_9 = arith.constant 0 : index
    %15 = vector.load %arg2[%c0_8, %c0_9] : memref<4x512xf32, #tpu.memory_space<vmem>>, vector<4x512xf32>
    tpu.vector_store %arg2[%c0_8, %c0_9], %14 {strides = array<i32>} : memref<4x512xf32, #tpu.memory_space<vmem>>, vector<4x512xf32>,
    return
  }
}

</mosaic_0001>

<bundles_post_ra>
// kernel: _first_step.1
= control target key start
LH: loop header
LB: loop body
LE: loop exit
PB: predicated region body
PF: predicated region fallthrough
CT: control target
= control target key end

     0   :  { %s67_s0 = inlined_call_operand.vmem [shape: f32[4,512], index: 0, kind: input, shape index: {}]   ;;  %s68_s1 = inlined_call_operand.vmem [shape: f32[4,512], index: 1, kind: output, shape index: {0}]   ;;  %s69_s2 = inlined_call_operand.vmem [shape: f32[4,512], index: 2, kind: output, shape index: {1}]  }
   0x1   :  { %v10_v0 = vld [vmem:[%s67_s0] sm:$0xff]  ;;  %v11_v1 = vld [vmem:[%s67_s0 + $0x8] sm:$0xff] }
   0x2   :  { %v12_v2 = vmax.f32 %v10_v0, 0.0  ;;  %v13_v3 = vmax.f32 %v11_v1, 0.0 }
   0x4   :  { %vm16_vm0 = vcmp.ge.f32.partialorder %v12_v2, 0.5  ;;  %vm17_vm1 = vcmp.ge.f32.partialorder %v13_v3, 0.5 }
   0x5   :  { %v18_v4 = vsel %vm16_vm0, %v12_v2, 0.0  ;;  %v19_v5 = vsel %vm17_vm1, %v13_v3, 0.0  ;;  %v22_v6 = vsel %vm16_vm0, 0.0, %v12_v2  ;;  %v23_v7 = vsel %vm17_vm1, 0.0, %v13_v3 }
   0x6   :  { %20 = vst [vmem:[%s68_s1] sm:$0xff] %v18_v4  ;;  %21 = vst [vmem:[%s68_s1 + $0x8] sm:$0xff] %v19_v5 }
   0x7   :  { %24 = vst [vmem:[%s69_s2] sm:$0xff] %v22_v6  ;;  %25 = vst [vmem:[%s69_s2 + $0x8] sm:$0xff] %v23_v7 }

</bundles_post_ra>
